<compile_context>
chip_gen: v6e
topology: v6e:2x2x1
jax: 0.10.0
libtpu: 0.0.40
codegen_flags: <defaults>
</compile_context>

<pallas_src>
import functools

import jax
import jax.numpy as jnp
from jax.experimental import pallas as pl
from jax.experimental.pallas import tpu as pltpu


_LANE = 128                              # lane width (last-dim tile)
_SUBLANE = 8                             # f32 sublane count
_MAX_TM = 2048                           # upper bound on the batch tile
_VMEM_TILE_BUDGET = 20 * 1024 * 1024     # budget for streaming tiles + weights
_VMEM_LIMIT = 32 * 1024 * 1024           # scoped VMEM limit, safe on v5e/v6e/v7x


def _round_up(x, m):
    return (x + m - 1) // m * m


def _cdiv(a, b):
    return (a + b - 1) // b


def _ann_kernel(x_ref, w1_ref, b1_ref, w2_ref, b2_ref, out_ref):
    """out = relu(x @ W1 + b1) @ W2 + b2 for one batch tile.

    x arrives as f32 (single HBM read) and is cast to bf16 on the VPU (hidden
    under the MXU).  Both matmuls run bf16 x bf16 with f32 MXU accumulation;
    bias add + ReLU stay f32 on the VPU.  hidden / classes are padded to 128
    lanes by prepare_params, so every store is an unmasked, lane-dense vst.
    """
    x = x_ref[...].astype(jnp.bfloat16)                        # (tm, f_pad)
    h = jnp.dot(x, w1_ref[...], preferred_element_type=jnp.float32)
    h = jnp.maximum(h + b1_ref[...], 0.0)
    out = jnp.dot(h.astype(jnp.bfloat16), w2_ref[...],
                  preferred_element_type=jnp.float32)
    out_ref[...] = (out + b2_ref[...]).astype(out_ref.dtype)


def prepare_params(w1, b1, w2, b2):
    """Pad weights to lane multiples and cast matmul operands to bf16, ONCE.

    Hoisted out of the per-call path (perf-review item: no per-forward weight
    reshuffling).  Returns (padded_params, dims) where dims is a static tuple
    (in_features, num_classes) for simple_ann_forward.
    """
    in_features, hidden = w1.shape
    num_classes = w2.shape[1]
    f_pad = _round_up(in_features, _LANE)
    h_pad = _round_up(hidden, _LANE)
    c_pad = _round_up(num_classes, _LANE)
    # TODO(synk): align h_pad to 256 on v6e/v7x (256x256 MXU) once the kernel
    # is MXU-bound; irrelevant while it is HBM-bound on streaming x.
    w1_p = jnp.zeros((f_pad, h_pad), jnp.bfloat16).at[
        :in_features, :hidden].set(w1.astype(jnp.bfloat16))
    b1_p = jnp.zeros((1, h_pad), jnp.float32).at[:, :hidden].set(b1[None, :])
    w2_p = jnp.zeros((h_pad, c_pad), jnp.bfloat16).at[
        :hidden, :num_classes].set(w2.astype(jnp.bfloat16))
    b2_p = jnp.zeros((1, c_pad), jnp.float32).at[
        :, :num_classes].set(b2[None, :])
    return (w1_p, b1_p, w2_p, b2_p), (in_features, num_classes)


def _resident_spec(block_shape):
    """Grid-invariant block: fetched once, VMEM-resident; single-buffered when
    the installed JAX supports pipeline_mode (saves 1x its VMEM footprint)."""
    idx = lambda i: (0,) * len(block_shape)
    if hasattr(pl, "Buffered"):
        try:
            return pl.BlockSpec(block_shape, idx, pipeline_mode=pl.Buffered(1))
        except TypeError:
            pass
    return pl.BlockSpec(block_shape, idx)


def _choose_tm(batch, f_pad, h_pad, c_pad):
    """Derive the batch tile from a VMEM budget instead of a hard-coded 256."""
    # Per-row VMEM bytes: double-buffered f32 x tile, double-buffered f32 out
    # tile, f32 h intermediate, plus in-kernel bf16 copies of x and h.
    per_row = (2 * f_pad * 4) + (2 * c_pad * 4) + h_pad * 4 + f_pad * 2 + h_pad * 2
    resident = (f_pad * h_pad + h_pad * c_pad) * 2 + (h_pad + c_pad) * 4
    avail = max(_VMEM_TILE_BUDGET - resident, per_row * _SUBLANE)
    tm_cap = max(_SUBLANE, min(_MAX_TM, (avail // per_row) // _SUBLANE * _SUBLANE))
    b8 = _round_up(batch, _SUBLANE)
    tm = min(tm_cap, b8)
    # Guarantee >= 2 grid steps for mid-size batches so the "parallel" batch
    # axis feeds both v7x TensorCores; costs one extra ~0.35us step elsewhere.
    if b8 >= 2 * _SUBLANE:
        tm = min(tm, _round_up(_cdiv(b8, 2), _SUBLANE))
    return tm


@functools.partial(jax.jit, static_argnames=("dims",))
def simple_ann_forward(x_nchw, padded_params, dims):
    """Forward pass matching SimpleANN.forward.

    Args:
      x_nchw: (B, C, H, W) float32 input (PyTorch NCHW convention).
      padded_params: output of prepare_params (bf16 W1/W2, f32 b1/b2, padded).
      dims: (in_features, num_classes) static ints from prepare_params.

    Returns:
      (B, num_classes) float32 logits.
    """
    in_features, num_classes = dims
    w1_p, b1_p, w2_p, b2_p = padded_params
    f_pad, h_pad = w1_p.shape
    c_pad = w2_p.shape[1]
    batch = x_nchw.shape[0]

    # nn.Flatten(): (B, C, H, W) -> (B, C*H*W)   (glue, plain JAX)
    x2d = x_nchw.reshape(batch, -1)
    # Feature-dim zero pad only when in_features % 128 != 0 (math-neutral).
    if f_pad != in_features:
        x2d = jnp.pad(x2d, ((0, 0), (0, f_pad - in_features)))

    tm = _choose_tm(batch, f_pad, h_pad, c_pad)
    grid = (_cdiv(batch, tm),)          # batch unpadded; last block is masked

    flops = 2 * batch * (f_pad * h_pad + h_pad * c_pad)
    bytes_accessed = (batch * f_pad * 4                       # x (f32, read once)
                      + (f_pad * h_pad + h_pad * c_pad) * 2   # bf16 weights
                      + (h_pad + c_pad) * 4                   # biases
                      + batch * c_pad * 4)                    # out

    out_p = pl.pallas_call(
        _ann_kernel,
        out_shape=jax.ShapeDtypeStruct((batch, c_pad), jnp.float32),
        grid_spec=pltpu.PrefetchScalarGridSpec(
            num_scalar_prefetch=0,
            grid=grid,
            in_specs=[
                # x streams through the batch grid as f32 (cast in-kernel).
                pl.BlockSpec((tm, f_pad), lambda i: (i, 0)),
                # Weights / biases: constant index_map -> VMEM-resident,
                # single-buffered where supported.
                _resident_spec((f_pad, h_pad)),
                _resident_spec((1, h_pad)),
                _resident_spec((h_pad, c_pad)),
                _resident_spec((1, c_pad)),
            ],
            out_specs=pl.BlockSpec((tm, c_pad), lambda i: (i, 0)),
        ),
        compiler_params=pltpu.CompilerParams(
            # Batch axis is embarrassingly parallel: shards across the two
            # TensorCores on v7x; free on single-TC v5e/v6e.
            dimension_semantics=("parallel",),
            vmem_limit_bytes=_VMEM_LIMIT,
        ),
        cost_estimate=pl.CostEstimate(
            flops=flops, transcendentals=0, bytes_accessed=bytes_accessed),
    )(x2d, w1_p, b1_p, w2_p, b2_p)

    # Strip only the class padding (batch was never padded).
    return out_p[:, :num_classes]


def init_params(key, input_size, hidden_size, num_classes):
    """Deterministic nn.Linear-style init: U(-1/sqrt(fan_in), 1/sqrt(fan_in))."""
    k1, k2, k3, k4 = jax.random.split(key, 4)
    bound1 = 1.0 / jnp.sqrt(jnp.float32(input_size))
    bound2 = 1.0 / jnp.sqrt(jnp.float32(hidden_size))
    w1 = jax.random.uniform(k1, (input_size, hidden_size), jnp.float32,
                            minval=-bound1, maxval=bound1)
    b1 = jax.random.uniform(k2, (hidden_size,), jnp.float32,
                            minval=-bound1, maxval=bound1)
    w2 = jax.random.uniform(k3, (hidden_size, num_classes), jnp.float32,
                            minval=-bound2, maxval=bound2)
    b2 = jax.random.uniform(k4, (num_classes,), jnp.float32,
                            minval=-bound2, maxval=bound2)
    return w1, b1, w2, b2


if __name__ == "__main__":
    # Small shapes consistent with the module: batch=2, 1 channel, 16x16 image
    # -> input_size = 256, hidden_size = 32, num_classes = 10.
    batch, channels, height, width = 2, 1, 16, 16
    input_size = channels * height * width
    hidden_size = 32
    num_classes = 10

    key = jax.random.PRNGKey(0)
    k_x, k_p = jax.random.split(key)
    x = jax.random.normal(k_x, (batch, channels, height, width), jnp.float32)
    w1, b1, w2, b2 = init_params(k_p, input_size, hidden_size, num_classes)

    # Weight padding / bf16 cast happens once, outside the per-call path.
    padded_params, dims = prepare_params(w1, b1, w2, b2)

    out = simple_ann_forward(x, padded_params, dims=dims)
    out = jax.block_until_ready(out)
    assert out.shape == (batch, num_classes)

    x2d = x.reshape(batch, -1)

    # Tight check vs. a pure-JAX reference using the same bf16-in /
    # f32-accumulate recipe (zero padding is exact, so these agree closely).
    h_ref = jnp.maximum(
        jnp.dot(x2d.astype(jnp.bfloat16), w1.astype(jnp.bfloat16),
                preferred_element_type=jnp.float32) + b1, 0.0)
    ref_bf16 = jnp.dot(h_ref.astype(jnp.bfloat16), w2.astype(jnp.bfloat16),
                       preferred_element_type=jnp.float32) + b2
    assert jnp.allclose(out, ref_bf16, atol=1e-4, rtol=1e-4)

    # Loose check vs. the full-f32 torch-equivalent reference (bf16 rounding).
    ref_f32 = jnp.maximum(x2d @ w1 + b1, 0.0) @ w2 + b2
    assert jnp.allclose(out, ref_f32, atol=5e-2, rtol=5e-2)

    print("KERNEL_OK")
</pallas_src>

<mosaic_0001>
module attributes {stable_mosaic.version = 11 : i64} {
  func.func @_ann_kernel(%arg0: i32, %arg1: memref<8x256xf32, #tpu.memory_space<vmem>>, %arg2: memref<256x128xbf16, #tpu.memory_space<vmem>>, %arg3: memref<1x128xf32, #tpu.memory_space<vmem>>, %arg4: memref<128x128xbf16, #tpu.memory_space<vmem>>, %arg5: memref<1x128xf32, #tpu.memory_space<vmem>>, %arg6: memref<8x128xf32, #tpu.memory_space<vmem>>) attributes {dimension_semantics = [#tpu.dimension_semantics<parallel>], iteration_bounds = array<i64: 1>, scalar_prefetch = 0 : i64, scratch_operands = 0 : i64, tpu.core_type = #tpu.core_type<tc>, window_params = [{transform_indices = @transform_0, window_bounds = array<i64: 8, 256>}, {pipeline_mode = #tpu.pipeline_mode<synchronous>, transform_indices = @transform_1, window_bounds = array<i64: 256, 128>}, {pipeline_mode = #tpu.pipeline_mode<synchronous>, transform_indices = @transform_2, window_bounds = array<i64: 1, 128>}, {pipeline_mode = #tpu.pipeline_mode<synchronous>, transform_indices = @transform_3, window_bounds = array<i64: 128, 128>}, {pipeline_mode = #tpu.pipeline_mode<synchronous>, transform_indices = @transform_4, window_bounds = array<i64: 1, 128>}, {transform_indices = @transform_5, window_bounds = array<i64: 8, 128>}]} {
    %c0 = arith.constant 0 : index
    %c0_0 = arith.constant 0 : index
    %0 = vector.load %arg1[%c0, %c0_0] : memref<8x256xf32, #tpu.memory_space<vmem>>, vector<8x256xf32>
    %1 = arith.truncf %0 : vector<8x256xf32> to vector<8x256xbf16>
    %c0_1 = arith.constant 0 : index
    %c0_2 = arith.constant 0 : index
    %2 = vector.load %arg2[%c0_1, %c0_2] : memref<256x128xbf16, #tpu.memory_space<vmem>>, vector<256x128xbf16>
    %cst = arith.constant dense<0.000000e+00> : vector<8x128xf32>
    %3 = tpu.matmul %1, %2, %cst {dimension_numbers = #tpu.dot_dimension_numbers<[1], [0], [0], [1], [0, 0, 1, 1], [], []>} : vector<8x256xbf16>, vector<256x128xbf16>, vector<8x128xf32> -> vector<8x128xf32>
    %c0_3 = arith.constant 0 : index
    %c0_4 = arith.constant 0 : index
    %4 = vector.load %arg3[%c0_3, %c0_4] : memref<1x128xf32, #tpu.memory_space<vmem>>, vector<1x128xf32>
    %5 = vector.broadcast %4 : vector<1x128xf32> to vector<8x128xf32>
    %6 = arith.addf %3, %5 : vector<8x128xf32>
    %cst_5 = arith.constant 0.000000e+00 : f32
    %7 = vector.broadcast %cst_5 : f32 to vector<8x128xf32>
    %8 = arith.maximumf %6, %7 : vector<8x128xf32>
    %9 = arith.truncf %8 : vector<8x128xf32> to vector<8x128xbf16>
    %c0_6 = arith.constant 0 : index
    %c0_7 = arith.constant 0 : index
    %10 = vector.load %arg4[%c0_6, %c0_7] : memref<128x128xbf16, #tpu.memory_space<vmem>>, vector<128x128xbf16>
    %cst_8 = arith.constant dense<0.000000e+00> : vector<8x128xf32>
    %11 = tpu.matmul %9, %10, %cst_8 {dimension_numbers = #tpu.dot_dimension_numbers<[1], [0], [0], [1], [0, 0, 1, 1], [], []>} : vector<8x128xbf16>, vector<128x128xbf16>, vector<8x128xf32> -> vector<8x128xf32>
    %c0_9 = arith.constant 0 : index
    %c0_10 = arith.constant 0 : index
    %12 = vector.load %arg5[%c0_9, %c0_10] : memref<1x128xf32, #tpu.memory_space<vmem>>, vector<1x128xf32>
    %13 = vector.broadcast %12 : vector<1x128xf32> to vector<8x128xf32>
    %14 = arith.addf %11, %13 : vector<8x128xf32>
    %c0_11 = arith.constant 0 : index
    %c0_12 = arith.constant 0 : index
    %15 = vector.load %arg6[%c0_11, %c0_12] : memref<8x128xf32, #tpu.memory_space<vmem>>, vector<8x128xf32>
    tpu.vector_store %arg6[%c0_11, %c0_12], %14 {strides = array<i32>} : memref<8x128xf32, #tpu.memory_space<vmem>>, vector<8x128xf32>,
    return
  }
  func.func @transform_0(%arg0: i32) -> (i32, i32) {
    %c0_i32 = arith.constant 0 : i32
    %c0_i32_0 = arith.constant 0 : i32
    return %arg0, %c0_i32 : i32, i32
  }
  func.func @transform_1(%arg0: i32) -> (i32, i32) {
    %c0_i32 = arith.constant 0 : i32
    %c0_i32_0 = arith.constant 0 : i32
    %c0_i32_1 = arith.constant 0 : i32
    return %c0_i32, %c0_i32_0 : i32, i32
  }
  func.func @transform_2(%arg0: i32) -> (i32, i32) {
    %c0_i32 = arith.constant 0 : i32
    %c0_i32_0 = arith.constant 0 : i32
    %c0_i32_1 = arith.constant 0 : i32
    return %c0_i32, %c0_i32_0 : i32, i32
  }
  func.func @transform_3(%arg0: i32) -> (i32, i32) {
    %c0_i32 = arith.constant 0 : i32
    %c0_i32_0 = arith.constant 0 : i32
    %c0_i32_1 = arith.constant 0 : i32
    return %c0_i32, %c0_i32_0 : i32, i32
  }
  func.func @transform_4(%arg0: i32) -> (i32, i32) {
    %c0_i32 = arith.constant 0 : i32
    %c0_i32_0 = arith.constant 0 : i32
    %c0_i32_1 = arith.constant 0 : i32
    return %c0_i32, %c0_i32_0 : i32, i32
  }
  func.func @transform_5(%arg0: i32) -> (i32, i32) {
    %c0_i32 = arith.constant 0 : i32
    %c0_i32_0 = arith.constant 0 : i32
    return %arg0, %c0_i32 : i32, i32
  }
}

</mosaic_0001>

<bundles_post_ra>
// kernel: simple_ann_forward.1
= control target key start
LH: loop header
LB: loop body
LE: loop exit
PB: predicated region body
PF: predicated region fallthrough
CT: control target
= control target key end

     0   :  { %10 = vsyncpa [#allocation3], 0  ;;  %s637_s0 = inlined_call_operand.vmem [shape: f32[2,256], index: 0, kind: input, shape index: {}]   ;;  %s638_s1 = inlined_call_operand.hbm [shape: bf16[256,128], index: 1, kind: input, shape index: {}]   ;;  %s639_s2 = inlined_call_operand.vmem [shape: f32[1,128], index: 2, kind: input, shape index: {}]   ;;  %s640_s3 = inlined_call_operand.hbm [shape: bf16[128,128], index: 3, kind: input, shape index: {}]   ;;  %s641_s4 = inlined_call_operand.vmem [shape: f32[1,128], index: 4, kind: input, shape index: {}]   ;;  %s642_s5 = inlined_call_operand.hbm [shape: f32[2,128], index: 5, kind: output, shape index: {}]  }
   0x1   :  { %11 = vsyncpa [#allocation6], 0 }
   0x2   :  { %12 = vsyncpa [#allocation4], 0  ;;  %s568_s18 = smov [#allocation2]  }
   0x3   :  { %s20_s19 = sshll.u32 %s568_s18, 4  ;;  %s21_s19 = int_to_ptr.vmem [resolvable:$true] %s20_s19 }
   0x4   :  { %s510_s20 = scalar_lea.vmem %s21_s19, 2048  ;;  %p515_p1 = scmp.lt.s32.totalorder %s21_s19, %s21_s19 }
   0x5   :  { %p511_p0 = scmp.ne.s32.totalorder %s21_s19, %s510_s20  ;;  %p516_p2 = scmp.lt.s32.totalorder %s510_s20, %s510_s20 }
   0x7   :  { %p517_p3 = por %p516_p2, %p515_p1 }
   0x9   :  { %p518_p4 = pnand %p517_p3, %p511_p0 }
   0xb   :  { %521 = shalt.err (!%p518_p4)
}
   0xc   :  { %s569_s21 = smov 64   ;;  %s570_s22 = smov 4  }
   0xd   :  { %26 = dma.hbm_to_vmem [thread:$0]  %s638_s1, 2048, %s21_s19, [#allocation3], %s569_s21, %s569_s21, %s570_s22  }
   0xe   :  { %s571_s25 = smov [#allocation5]  }
   0xf   :  { %s34_s26 = sshll.u32 %s571_s25, 4  ;;  %s35_s26 = int_to_ptr.vmem [resolvable:$true] %s34_s26 }
  0x10   :  { %s530_s27 = scalar_lea.vmem %s35_s26, 1024  ;;  %p535_p6 = scmp.lt.s32.totalorder %s35_s26, %s35_s26 }
  0x11   :  { %p531_p5 = scmp.ne.s32.totalorder %s35_s26, %s530_s27  ;;  %p536_p7 = scmp.lt.s32.totalorder %s530_s27, %s530_s27 }
  0x13   :  { %p537_p8 = por %p536_p7, %p535_p6 }
  0x15   :  { %p538_p9 = pnand %p537_p8, %p531_p5 }
  0x17   :  { %541 = shalt.err (!%p538_p9)
}
  0x18   :  { %40 = dma.hbm_to_vmem [thread:$0]  %s640_s3, 1024, %s35_s26, [#allocation6], %s569_s21, %s569_s21, %s570_s22  }
  0x19   :  { %562 = dma.done.wait [#allocation3], 2048  }
  0x1a   :  { %563 = vsyncadd [#allocation3], 4294965248 }
  0x1b   :  { %564 = dma.done.wait [#allocation6], 1024  }
  0x1c   :  { %565 = vsyncadd [#allocation6], 4294966272  ;;  %v572_v0 = vmov 0.0   ;;  %v474_v1 = vld [vmem:[#allocation2 + $0x78] sm:$0xff]   ;;  %v476_v3 = vld [vmem:[#allocation2 + $0x70] sm:$0xff]   ;;  %vm573_vm0 = vmmov 0  }
  0x1d   :  { %444 = vmatprep.subr.bf16.mxu1 %v572_v0  ;;  %v475_v2 = vld [vmem:[#allocation2 + $0x38] sm:$0xff]   ;;  %413 = vmatprep.subr.bf16.mxu0 %v474_v1  ;;  %v477_v4 = vld [vmem:[#allocation2 + $0x30] sm:$0xff]   ;;  %v478_v5 = vld [vmem:[#allocation2 + $0x68] sm:$0xff]  }
  0x1e   :  { %414 = vmatpush3.bf16.msra.mxu0 %v475_v2  ;;  %v479_v6 = vld [vmem:[#allocation2 + $0x28] sm:$0xff]   ;;  %v480_v7 = vld [vmem:[#allocation2 + $0x60] sm:$0xff]   ;;  %v482_v9 = vld [vmem:[#allocation2 + $0x58] sm:$0xff]   ;;  %460 = vmatprep.mubr.msk.bf16.mxu1 %vm573_vm0, %v572_v0 }
  0x1f   :  { %415 = vmatprep.subr.bf16.mxu0 %v476_v3  ;;  %v481_v8 = vld [vmem:[#allocation2 + $0x20] sm:$0xff]   ;;  %v483_v10 = vld [vmem:[#allocation2 + $0x18] sm:$0xff]   ;;  %v484_v11 = vld [vmem:[#allocation2 + $0x50] sm:$0xff]  }
  0x20   :  { %v485_v12 = vld [vmem:[#allocation2 + $0x10] sm:$0xff]   ;;  %v500_v13 = vld.sshfl [vmem:[%s637_s0] sm:$0xff pattern:$0x76325410]  ;;  %v492_v15 = vld [vmem:[#allocation5 + $0x38] sm:$0xff]  }
  0x21   :  { %v501_v14 = vld.sshfl [vmem:[%s637_s0 + $0x8] sm:$0xff pattern:$0x76325410]  ;;  %445 = vmatpush3.bf16.msra.mxu1 %v492_v15  ;;  %v493_v17 = vld [vmem:[#allocation5 + $0x30] sm:$0xff]   ;;  %v488_v20 = vld [vmem:[#allocation2 + $0x40] sm:$0xff]  }
  0x22   :  { %416 = vmatpush3.bf16.msra.mxu0 %v477_v4  ;;  %v486_v16 = vld [vmem:[#allocation2 + $0x48] sm:$0xff]   ;;  %v75_v19 = vcombine.high %v500_v13, %v501_v14  ;;  %446 = vmatprep.subr.bf16.mxu1 %v572_v0  ;;  %v74_v23 = vcombine.low %v500_v13, %v501_v14  ;;  %v489_v24 = vld [vmem:[#allocation2] sm:$0xff]   ;;  %v496_v27 = vld [vmem:[#allocation5 + $0x18] sm:$0xff]  }
  0x23   :  { %417 = vmatprep.subr.bf16.mxu0 %v478_v5  ;;  %v487_v18 = vld [vmem:[#allocation2 + $0x8] sm:$0xff]   ;;  %v495_v25 = vld [vmem:[#allocation5 + $0x20] sm:$0xff]   ;;  %v497_v28 = vld [vmem:[#allocation5 + $0x10] sm:$0xff]  }
  0x24   :  { %v494_v21 = vld [vmem:[#allocation5 + $0x28] sm:$0xff]   ;;  %v79_v22 = vpack.c.bf16 %v75_v19, %v75_v19  ;;  %v78_v26 = vpack.c.bf16 %v74_v23, %v74_v23  ;;  %v499_v30 = vld [vmem:[#allocation5] sm:$0xff]  }
  0x25   :  { %447 = vmatpush3.bf16.msra.mxu1 %v493_v17  ;;  %v498_v29 = vld [vmem:[#allocation5 + $0x8] sm:$0xff]   ;;  %v387_v32 = vld [vmem:[%s639_s2] ss:$0 sm:$0xff] }
  0x26   :  { %418 = vmatpush3.bf16.msra.mxu0 %v479_v6  ;;  %247 = vmatprep.mubr.bf16.mxu0 %v79_v22  ;;  %v404_v40 = vld [vmem:[%s641_s4] ss:$0 sm:$0xff] }
  0x27   :  { %419 = vmatprep.subr.bf16.mxu0 %v480_v7  ;;  %448 = vmatprep.subr.bf16.mxu1 %v572_v0 }
  0x29   :  { %449 = vmatpush3.bf16.msra.mxu1 %v494_v21 }
  0x2a   :  { %420 = vmatpush3.bf16.msra.mxu0 %v481_v8  ;;  %450 = vmatprep.subr.bf16.mxu1 %v572_v0 }
  0x2b   :  { %421 = vmatprep.subr.bf16.mxu0 %v482_v9 }
  0x2d   :  { %451 = vmatpush3.bf16.msra.mxu1 %v495_v25 }
  0x2e   :  { %422 = vmatpush3.bf16.msra.mxu0 %v483_v10  ;;  %452 = vmatprep.subr.bf16.mxu1 %v572_v0 }
  0x2f   :  { %423 = vmatprep.subr.bf16.mxu0 %v484_v11 }
  0x31   :  { %453 = vmatpush3.bf16.msra.mxu1 %v496_v27 }
  0x32   :  { %424 = vmatpush3.bf16.msra.mxu0 %v485_v12  ;;  %454 = vmatprep.subr.bf16.mxu1 %v572_v0 }
  0x33   :  { %425 = vmatprep.subr.bf16.mxu0 %v486_v16 }
  0x35   :  { %455 = vmatpush3.bf16.msra.mxu1 %v497_v28 }
  0x36   :  { %426 = vmatpush3.bf16.msra.mxu0 %v487_v18  ;;  %456 = vmatprep.subr.bf16.mxu1 %v572_v0 }
  0x37   :  { %427 = vmatprep.subr.bf16.mxu0 %v488_v20 }
  0x39   :  { %457 = vmatpush3.bf16.msra.mxu1 %v498_v29 }
  0x3a   :  { %428 = vmatpush3.bf16.msra.mxu0 %v489_v24  ;;  %458 = vmatprep.subr.bf16.mxu1 %v572_v0 }
  0x3d   :  { %248 = vmatmul.mubr.bf16.vlgmr.msra.gmra.mxu0 %v78_v26  ;;  %459 = vmatpush3.bf16.msra.mxu1 %v499_v30 }
  0xfd   :  { %v429_v31 = vpop.f32.mrf.mxu0 }
  0xff   :  { %v430_v33 = vpop.f32.mrf.mxu0 }
 0x100   :  { %v431_v34 = vadd.f32 %v430_v33, %v429_v31 }
 0x101   :  { %v432_v35 = vpop.f32.mrf.mxu0 }
 0x102   :  { %v250_v36 = vadd.f32 %v431_v34, %v387_v32 }
 0x103   :  { %v433_v37 = vpop.f32.mrf.mxu0 }
 0x104   :  { %v255_v38 = vmax.f32 %v250_v36, 0.0 }
 0x106   :  { %v256_v39 = vpack.c.bf16 %v255_v38, %v255_v38 }
 0x108   :  { %461 = vmatmul.mubr.bf16.vlgmr.msra.gmra.mxu1 %v256_v39 }
 0x1c8   :  { %v362_v41 = vpop.f32.mrf.mxu1 }
 0x1c9   :  { %v363_v42 = vadd.f32 %v404_v40, %v362_v41 }
 0x1ca   :  { %v462_v43 = vpop.f32.mrf.mxu1 }
 0x1cb   :  { %368 = vst [vmem:[#allocation7] sm:$0xff] %v363_v42 }
 0x1cc   :  { %v365_v44 = vpop.f32.mrf.mxu1 }
 0x1ce   :  { %v463_v45 = vpop.f32.mrf.mxu1 }
 0x1cf   :  { %373 = vsyncadd [#allocation4], 96  ;;  %s574_s2 = smov [#allocation7]  }
 0x1d0   :  { %s374_s10 = sshll.u32 %s574_s2, 4  ;;  %s375_s10 = int_to_ptr.vmem [resolvable:$true] %s374_s10 }
 0x1d1   :  { %s542_s11 = scalar_lea.vmem %s375_s10, 32  ;;  %s546_s12 = scalar_lea.vmem %s375_s10, 128 }
 0x1d2   :  { %p543_p10 = scmp.ne.s32.totalorder %s375_s10, %s542_s11  ;;  %p547_p11 = scmp.lt.s32.totalorder %s375_s10, %s375_s10 }
 0x1d3   :  { %p548_p12 = scmp.lt.s32.totalorder %s546_s12, %s542_s11 }
 0x1d5   :  { %p549_p13 = por %p548_p12, %p547_p11 }
 0x1d7   :  { %p550_p0 = pnand %p549_p13, %p543_p10 }
 0x1d9   :  { %553 = shalt.err (!%p550_p0)
}
 0x1da   :  { %s575_s13 = smov 32   ;;  %s576_s4 = smov 2  }
 0x1db   :  { %380 = dma.vmem_to_hbm [thread:$0]  %s375_s10, 32, %s642_s5, [#allocation4], %s575_s13, %s575_s13, %s576_s4  }
 0x1dc   :  { %566 = dma.done.wait [#allocation4], 128  }
 0x1dd   :  { %567 = vsyncadd [#allocation4], 4294967168 }
 0x1de   :  { %384 = vsyncpa [#allocation3], 1 }
 0x1df   :  { %385 = vsyncpa [#allocation6], 1 }
 0x1e0   :  { %386 = vsyncpa [#allocation4], 1 }

</bundles_post_ra>
